<compile_context>
chip_gen: v7x
topology: tpu7x:2x2x1
jax: 0.10.0
libtpu: 0.0.40
codegen_flags: <defaults>
</compile_context>

<pallas_src>
import functools

import jax
import jax.numpy as jnp
import numpy as np
from jax.experimental import pallas as pl
from jax.experimental.pallas import tpu as pltpu


def _round_down(x, m):
    return (x // m) * m


def _vmem_capacity_bytes():
    """Generation-aware VMEM capacity with a conservative (v7x) fallback."""
    try:
        info = pltpu.get_tpu_info()
        cap = getattr(info, "vmem_capacity_bytes", None)
        if cap:
            return int(cap)
    except Exception:
        pass
    return 64 << 20


def _toucan_loss_kernel(pf_ref, gf_ref, pd_ref, gd_ref, pp_ref, gp_ref,
                        pe_ref, ge_ref, fel_ref, invf_ref, tlen_ref, invt_ref,
                        dist_ref, dur_ref, pitch_ref, energy_ref, acc_ref,
                        *, tile_n, per_core, inv_b_odim):
    c = pl.program_id(0)          # core-split partition
    n = pl.program_id(1)          # streamed tile along the flattened axis
    B, Tmax = pd_ref.shape

    # ---- first step of each partition: reset accumulator; compute the tiny
    #      text-axis losses (VMEM-resident inputs, negligible cost; the
    #      wrapper reads partition 0). ----
    @pl.when(n == 0)
    def _():
        acc_ref[...] = jnp.zeros_like(acc_ref)

        tlen = tlen_ref[...]                                 # (B, 1) int32
        invt = invt_ref[...]                                 # (B, 1) f32
        pos_t = jax.lax.broadcasted_iota(jnp.int32, (B, Tmax), 1)
        dw = jnp.where(pos_t < tlen, invt, 0.0)              # mask / text_len

        # duration predictor loss: MSE against log(gold_durations + 1)
        log_gd = jnp.log(gd_ref[...].astype(jnp.float32) + 1.0)
        d_err = pd_ref[...].astype(jnp.float32) - log_gd
        dur_ref[...] = jnp.full(dur_ref.shape,
                                jnp.sum(d_err * d_err * dw), jnp.float32)

        p_err = pp_ref[...].astype(jnp.float32) - gp_ref[...].astype(jnp.float32)
        pitch_ref[...] = jnp.full(pitch_ref.shape,
                                  jnp.sum(p_err * p_err * dw), jnp.float32)

        e_err = pe_ref[...].astype(jnp.float32) - ge_ref[...].astype(jnp.float32)
        energy_ref[...] = jnp.full(energy_ref.shape,
                                   jnp.sum(e_err * e_err * dw), jnp.float32)

    # ---- hot loop: VPU-only elementwise masked |diff| accumulation.
    #      'base' uses the UNclamped tile index, so duplicate (clamped) tiles
    #      from the last partition and OOB garbage in the ragged last block
    #      are masked to exactly 0 by the select. ----
    base = (c * per_core + n) * tile_n
    pos = jax.lax.broadcasted_iota(jnp.int32, acc_ref.shape, 1) + base
    in_bounds = pos < fel_ref[...]                           # (B, tile_n)
    diff = pf_ref[...].astype(jnp.float32) - gf_ref[...].astype(jnp.float32)
    acc_ref[...] += jnp.where(in_bounds, jnp.abs(diff), 0.0)

    # ---- last step of each partition: single cross-lane reduce, per-row
    #      1/feat_len, scalar store of this partition's partial sum. ----
    @pl.when(n == per_core - 1)
    def _():
        row = jnp.sum(acc_ref[...], axis=-1, keepdims=True)  # (B, 1)
        part = jnp.sum(row * invf_ref[...]) * inv_b_odim
        dist_ref[...] = jnp.full(dist_ref.shape, part, jnp.float32)


def toucan_tts_loss(predicted_features, gold_features, features_lengths,
                    text_lengths, gold_durations, predicted_durations,
                    predicted_pitch, predicted_energy, gold_pitch, gold_energy,
                    max_tile_lanes=64 * 1024, num_core_splits=2):
    B, Lmax, odim = predicted_features.shape
    Tmax = gold_durations.shape[1]
    N = Lmax * odim
    itemsize = predicted_features.dtype.itemsize

    # --- generation-aware VMEM budget / limit ---
    vmem_cap = _vmem_capacity_bytes()
    vmem_limit = min((vmem_cap * 3) // 4, 96 << 20)   # 48 MiB on v7x, 96 MiB on 128 MiB parts
    budget = max(vmem_limit - (8 << 20), 2 << 20)     # reserve for text/col inputs etc.

    # per-lane cost: 2 feature tensors x 2 pipeline buffers (native dtype)
    # + one f32 accumulator, each with B sublane rows.
    nbuf = 2
    per_lane = B * (2 * nbuf * itemsize + 4)
    tile_n = max(128, min(budget // per_lane, int(max_tile_lanes)))
    tile_n = max(128, _round_down(tile_n, 128))
    if tile_n >= N:
        tile_n = N                                   # single full-extent block
    num_n = pl.cdiv(N, tile_n)
    nc = max(1, min(int(num_core_splits), num_n))
    per_core = pl.cdiv(num_n, nc)

    # --- lane-dense 2D layout (free, contiguous reshape; no HBM copies) ---
    pf = predicted_features.reshape(B, N)
    gf = gold_features.reshape(B, N)

    pd = predicted_durations.astype(jnp.float32).reshape(B, Tmax)
    gd = gold_durations.astype(jnp.int32).reshape(B, Tmax)
    pp = predicted_pitch.reshape(B, Tmax)
    pe = predicted_energy.reshape(B, Tmax)
    gp = gold_pitch.reshape(B, Tmax)
    ge = gold_energy.reshape(B, Tmax)

    flen = features_lengths.astype(jnp.int32).reshape(B)
    tlen = text_lengths.astype(jnp.int32).reshape(B)
    flen_elems = (flen * odim).reshape(B, 1)                     # int32 mask boundary
    # Zero-length rows contribute exactly 0 (matches masked_select semantics).
    inv_flen = jnp.where(flen > 0,
                         1.0 / jnp.maximum(flen, 1).astype(jnp.float32),
                         0.0).reshape(B, 1)
    inv_tlen = jnp.where(tlen > 0,
                         1.0 / jnp.maximum(tlen, 1).astype(jnp.float32),
                         0.0).reshape(B, 1)
    tlen_2d = tlen.reshape(B, 1)

    vmem = pltpu.MemorySpace.VMEM

    def feat_index_map(c, n):
        # Clamp so a fully out-of-range tile of the last partition re-reads
        # the final valid tile (its contribution is masked to 0 in-kernel).
        return (0, jnp.minimum(c * per_core + n, num_n - 1))

    feat_spec = pl.BlockSpec((B, tile_n), feat_index_map, memory_space=vmem)
    text_spec = pl.BlockSpec((B, Tmax), lambda c, n: (0, 0), memory_space=vmem)
    col_spec = pl.BlockSpec((B, 1), lambda c, n: (0, 0), memory_space=vmem)
    # Lane-dense (1, 8, 128) scalar-output blocks: unmasked stores, one row
    # per core partition so "parallel" partitions never share an output block.
    out_spec = pl.BlockSpec((1, 8, 128), lambda c, n: (c, 0, 0), memory_space=vmem)
    out_shape = jax.ShapeDtypeStruct((nc, 8, 128), jnp.float32)

    kernel = functools.partial(_toucan_loss_kernel, tile_n=tile_n,
                               per_core=per_core,
                               inv_b_odim=1.0 / float(B * odim))

    outs = pl.pallas_call(
        kernel,
        grid=(nc, per_core),
        out_shape=(out_shape,) * 4,
        in_specs=[feat_spec, feat_spec,
                  text_spec, text_spec, text_spec, text_spec,
                  text_spec, text_spec,
                  col_spec, col_spec, col_spec, col_spec],
        out_specs=(out_spec,) * 4,
        scratch_shapes=[pltpu.VMEM((B, tile_n), jnp.float32)],
        compiler_params=pltpu.CompilerParams(
            dimension_semantics=("parallel", "arbitrary"),
            vmem_limit_bytes=int(vmem_limit)),
    )(pf, gf, pd, gd, pp, gp, pe, ge, flen_elems, inv_flen, tlen_2d, inv_tlen)

    distance_loss = jnp.sum(outs[0][:, 0, 0])    # sum of per-partition partials
    duration_loss = outs[1][0, 0, 0]
    pitch_loss = outs[2][0, 0, 0]
    energy_loss = outs[3][0, 0, 0]
    return distance_loss, duration_loss, pitch_loss, energy_loss


def _reference_loss(pf, gf, flen, tlen, gd, pd, pp, pe, gp, ge):
    B, Lmax, odim = pf.shape
    Tmax = gd.shape[1]
    mask_l = (jnp.arange(Lmax)[None, :] < flen[:, None]).astype(jnp.float32)
    out_w = mask_l / flen[:, None].astype(jnp.float32) / (B * odim)
    dist = jnp.sum(jnp.abs(pf.astype(jnp.float32) - gf.astype(jnp.float32))
                   * out_w[:, :, None])

    mask_t = (jnp.arange(Tmax)[None, :] < tlen[:, None]).astype(jnp.float32)
    dw = mask_t / tlen[:, None].astype(jnp.float32)
    dur = jnp.sum((pd - jnp.log(gd.astype(jnp.float32) + 1.0)) ** 2 * dw)
    pitch = jnp.sum((pp[..., 0] - gp[..., 0]) ** 2 * dw)
    energy = jnp.sum((pe[..., 0] - ge[..., 0]) ** 2 * dw)
    return dist, dur, pitch, energy


if __name__ == "__main__":
    B, Lmax, odim, Tmax = 2, 40, 32, 8
    key = jax.random.PRNGKey(0)
    ks = jax.random.split(key, 8)

    predicted_features = jax.random.normal(ks[0], (B, Lmax, odim), jnp.float32)
    gold_features = jax.random.normal(ks[1], (B, Lmax, odim), jnp.float32)
    features_lengths = jnp.array([40, 27], dtype=jnp.int32)
    text_lengths = jnp.array([8, 5], dtype=jnp.int32)
    gold_durations = jax.random.randint(ks[2], (B, Tmax), 1, 6, dtype=jnp.int32)
    predicted_durations = jax.random.normal(ks[3], (B, Tmax), jnp.float32)
    predicted_pitch = jax.random.normal(ks[4], (B, Tmax, 1), jnp.float32)
    predicted_energy = jax.random.normal(ks[5], (B, Tmax, 1), jnp.float32)
    gold_pitch = jax.random.normal(ks[6], (B, Tmax, 1), jnp.float32)
    gold_energy = jax.random.normal(ks[7], (B, Tmax, 1), jnp.float32)

    args = (predicted_features, gold_features, features_lengths, text_lengths,
            gold_durations, predicted_durations, predicted_pitch,
            predicted_energy, gold_pitch, gold_energy)

    ref = _reference_loss(predicted_features, gold_features, features_lengths,
                          text_lengths, gold_durations, predicted_durations,
                          predicted_pitch, predicted_energy,
                          gold_pitch, gold_energy)

    # Path 1: tiny tiles (512 lanes) force the multi-tile accumulator, a
    # ragged last block, a clamped duplicate block and the 2-way core split.
    losses_small = toucan_tts_loss(*args, max_tile_lanes=512, num_core_splits=2)
    losses_small = jax.block_until_ready(losses_small)
    for got, want in zip(losses_small, ref):
        np.testing.assert_allclose(np.asarray(got), np.asarray(want),
                                   rtol=1e-5, atol=1e-5)

    # Path 2: default sizing (single full-extent, lane-dense tile).
    losses_big = toucan_tts_loss(*args)
    losses_big = jax.block_until_ready(losses_big)
    for got, want in zip(losses_big, ref):
        np.testing.assert_allclose(np.asarray(got), np.asarray(want),
                                   rtol=1e-5, atol=1e-5)

    print("KERNEL_OK")
</pallas_src>

<mosaic_0001>
module attributes {stable_mosaic.version = 11 : i64} {
  func.func @_toucan_loss_kernel(%arg0: i32, %arg1: i32, %arg2: memref<2x512xf32, #tpu.memory_space<vmem>>, %arg3: memref<2x512xf32, #tpu.memory_space<vmem>>, %arg4: memref<2x8xf32, #tpu.memory_space<vmem>>, %arg5: memref<2x8xi32, #tpu.memory_space<vmem>>, %arg6: memref<2x8xf32, #tpu.memory_space<vmem>>, %arg7: memref<2x8xf32, #tpu.memory_space<vmem>>, %arg8: memref<2x8xf32, #tpu.memory_space<vmem>>, %arg9: memref<2x8xf32, #tpu.memory_space<vmem>>, %arg10: memref<2x1xi32, #tpu.memory_space<vmem>>, %arg11: memref<2x1xf32, #tpu.memory_space<vmem>>, %arg12: memref<2x1xi32, #tpu.memory_space<vmem>>, %arg13: memref<2x1xf32, #tpu.memory_space<vmem>>, %arg14: memref<1x8x128xf32, #tpu.memory_space<vmem>>, %arg15: memref<1x8x128xf32, #tpu.memory_space<vmem>>, %arg16: memref<1x8x128xf32, #tpu.memory_space<vmem>>, %arg17: memref<1x8x128xf32, #tpu.memory_space<vmem>>, %arg18: memref<2x512xf32, #tpu.memory_space<vmem>>) attributes {dimension_semantics = [#tpu.dimension_semantics<parallel>, #tpu.dimension_semantics<arbitrary>], iteration_bounds = array<i64: 2, 2>, scalar_prefetch = 0 : i64, scratch_operands = 1 : i64, tpu.core_type = #tpu.core_type<tc>, window_params = [{transform_indices = @transform_0, window_bounds = array<i64: 2, 512>}, {transform_indices = @transform_1, window_bounds = array<i64: 2, 512>}, {pipeline_mode = #tpu.pipeline_mode<synchronous>, transform_indices = @transform_2, window_bounds = array<i64: 2, 8>}, {pipeline_mode = #tpu.pipeline_mode<synchronous>, transform_indices = @transform_3, window_bounds = array<i64: 2, 8>}, {pipeline_mode = #tpu.pipeline_mode<synchronous>, transform_indices = @transform_4, window_bounds = array<i64: 2, 8>}, {pipeline_mode = #tpu.pipeline_mode<synchronous>, transform_indices = @transform_5, window_bounds = array<i64: 2, 8>}, {pipeline_mode = #tpu.pipeline_mode<synchronous>, transform_indices = @transform_6, window_bounds = array<i64: 2, 8>}, {pipeline_mode = #tpu.pipeline_mode<synchronous>, transform_indices = @transform_7, window_bounds = array<i64: 2, 8>}, {pipeline_mode = #tpu.pipeline_mode<synchronous>, transform_indices = @transform_8, window_bounds = array<i64: 2, 1>}, {pipeline_mode = #tpu.pipeline_mode<synchronous>, transform_indices = @transform_9, window_bounds = array<i64: 2, 1>}, {pipeline_mode = #tpu.pipeline_mode<synchronous>, transform_indices = @transform_10, window_bounds = array<i64: 2, 1>}, {pipeline_mode = #tpu.pipeline_mode<synchronous>, transform_indices = @transform_11, window_bounds = array<i64: 2, 1>}, {transform_indices = @transform_12, window_bounds = array<i64: 1, 8, 128>}, {transform_indices = @transform_13, window_bounds = array<i64: 1, 8, 128>}, {transform_indices = @transform_14, window_bounds = array<i64: 1, 8, 128>}, {transform_indices = @transform_15, window_bounds = array<i64: 1, 8, 128>}]} {
    %c0_i32 = arith.constant 0 : i32
    %0 = arith.cmpi eq, %arg1, %c0_i32 : i32
    %1 = arith.extui %0 : i1 to i32
    %c0_i32_0 = arith.constant 0 : i32
    %2 = arith.cmpi ne, %1, %c0_i32_0 : i32
    scf.if %2 {
      %cst_11 = arith.constant 0.000000e+00 : f32
      %24 = vector.broadcast %cst_11 : f32 to vector<2x512xf32>
      %c0_12 = arith.constant 0 : index
      %c0_13 = arith.constant 0 : index
      %25 = vector.load %arg18[%c0_12, %c0_13] : memref<2x512xf32, #tpu.memory_space<vmem>>, vector<2x512xf32>
      tpu.vector_store %arg18[%c0_12, %c0_13], %24 {strides = array<i32>} : memref<2x512xf32, #tpu.memory_space<vmem>>, vector<2x512xf32>,
      %c0_14 = arith.constant 0 : index
      %c0_15 = arith.constant 0 : index
      %26 = vector.load %arg12[%c0_14, %c0_15] : memref<2x1xi32, #tpu.memory_space<vmem>>, vector<2x1xi32>
      %c0_16 = arith.constant 0 : index
      %c0_17 = arith.constant 0 : index
      %27 = vector.load %arg13[%c0_16, %c0_17] : memref<2x1xf32, #tpu.memory_space<vmem>>, vector<2x1xf32>
      %28 = tpu.iota {dimensions = array<i32: 1>} : vector<2x8xi32>
      %29 = vector.broadcast %26 : vector<2x1xi32> to vector<2x8xi32>
      %30 = arith.cmpi slt, %28, %29 : vector<2x8xi32>
      %cst_18 = arith.constant 0.000000e+00 : f32
      %31 = vector.shape_cast %27 : vector<2x1xf32> to vector<2x1xf32>
      %32 = vector.broadcast %31 : vector<2x1xf32> to vector<2x8xf32>
      %33 = vector.broadcast %cst_18 : f32 to vector<2x8xf32>
      %34 = arith.select %30, %32, %33 : vector<2x8xi1>, vector<2x8xf32>
      %c0_19 = arith.constant 0 : index
      %c0_20 = arith.constant 0 : index
      %35 = vector.load %arg5[%c0_19, %c0_20] : memref<2x8xi32, #tpu.memory_space<vmem>>, vector<2x8xi32>
      %36 = arith.sitofp %35 : vector<2x8xi32> to vector<2x8xf32>
      %cst_21 = arith.constant 1.000000e+00 : f32
      %37 = vector.broadcast %cst_21 : f32 to vector<2x8xf32>
      %38 = arith.addf %36, %37 : vector<2x8xf32>
      %39 = math.log %38 : vector<2x8xf32>
      %c0_22 = arith.constant 0 : index
      %c0_23 = arith.constant 0 : index
      %40 = vector.load %arg4[%c0_22, %c0_23] : memref<2x8xf32, #tpu.memory_space<vmem>>, vector<2x8xf32>
      %41 = arith.subf %40, %39 : vector<2x8xf32>
      %42 = arith.mulf %41, %41 : vector<2x8xf32>
      %43 = arith.mulf %42, %34 : vector<2x8xf32>
      %44 = vector.shape_cast %43 : vector<2x8xf32> to vector<1x2x8xf32>
      %cst_24 = arith.constant dense<0.000000e+00> : vector<1xf32>
      %45 = vector.multi_reduction <add>, %44, %cst_24 [1, 2] : vector<1x2x8xf32> to vector<1xf32>
      %46 = vector.shape_cast %45 : vector<1xf32> to vector<1x1x1xf32>
      %47 = vector.extract %46[0, 0, 0] : f32 from vector<1x1x1xf32>
      %48 = vector.broadcast %47 : f32 to vector<1x8x128xf32>
      %c0_25 = arith.constant 0 : index
      %c0_26 = arith.constant 0 : index
      %c0_27 = arith.constant 0 : index
      %49 = vector.load %arg15[%c0_25, %c0_26, %c0_27] : memref<1x8x128xf32, #tpu.memory_space<vmem>>, vector<1x8x128xf32>
      tpu.vector_store %arg15[%c0_25, %c0_26, %c0_27], %48 {strides = array<i32>} : memref<1x8x128xf32, #tpu.memory_space<vmem>>, vector<1x8x128xf32>,
      %c0_28 = arith.constant 0 : index
      %c0_29 = arith.constant 0 : index
      %50 = vector.load %arg6[%c0_28, %c0_29] : memref<2x8xf32, #tpu.memory_space<vmem>>, vector<2x8xf32>
      %c0_30 = arith.constant 0 : index
      %c0_31 = arith.constant 0 : index
      %51 = vector.load %arg7[%c0_30, %c0_31] : memref<2x8xf32, #tpu.memory_space<vmem>>, vector<2x8xf32>
      %52 = arith.subf %50, %51 : vector<2x8xf32>
      %53 = arith.mulf %52, %52 : vector<2x8xf32>
      %54 = arith.mulf %53, %34 : vector<2x8xf32>
      %55 = vector.shape_cast %54 : vector<2x8xf32> to vector<1x2x8xf32>
      %cst_32 = arith.constant dense<0.000000e+00> : vector<1xf32>
      %56 = vector.multi_reduction <add>, %55, %cst_32 [1, 2] : vector<1x2x8xf32> to vector<1xf32>
      %57 = vector.shape_cast %56 : vector<1xf32> to vector<1x1x1xf32>
      %58 = vector.extract %57[0, 0, 0] : f32 from vector<1x1x1xf32>
      %59 = vector.broadcast %58 : f32 to vector<1x8x128xf32>
      %c0_33 = arith.constant 0 : index
      %c0_34 = arith.constant 0 : index
      %c0_35 = arith.constant 0 : index
      %60 = vector.load %arg16[%c0_33, %c0_34, %c0_35] : memref<1x8x128xf32, #tpu.memory_space<vmem>>, vector<1x8x128xf32>
      tpu.vector_store %arg16[%c0_33, %c0_34, %c0_35], %59 {strides = array<i32>} : memref<1x8x128xf32, #tpu.memory_space<vmem>>, vector<1x8x128xf32>,
      %c0_36 = arith.constant 0 : index
      %c0_37 = arith.constant 0 : index
      %61 = vector.load %arg8[%c0_36, %c0_37] : memref<2x8xf32, #tpu.memory_space<vmem>>, vector<2x8xf32>
      %c0_38 = arith.constant 0 : index
      %c0_39 = arith.constant 0 : index
      %62 = vector.load %arg9[%c0_38, %c0_39] : memref<2x8xf32, #tpu.memory_space<vmem>>, vector<2x8xf32>
      %63 = arith.subf %61, %62 : vector<2x8xf32>
      %64 = arith.mulf %63, %63 : vector<2x8xf32>
      %65 = arith.mulf %64, %34 : vector<2x8xf32>
      %66 = vector.shape_cast %65 : vector<2x8xf32> to vector<1x2x8xf32>
      %cst_40 = arith.constant dense<0.000000e+00> : vector<1xf32>
      %67 = vector.multi_reduction <add>, %66, %cst_40 [1, 2] : vector<1x2x8xf32> to vector<1xf32>
      %68 = vector.shape_cast %67 : vector<1xf32> to vector<1x1x1xf32>
      %69 = vector.extract %68[0, 0, 0] : f32 from vector<1x1x1xf32>
      %70 = vector.broadcast %69 : f32 to vector<1x8x128xf32>
      %c0_41 = arith.constant 0 : index
      %c0_42 = arith.constant 0 : index
      %c0_43 = arith.constant 0 : index
      %71 = vector.load %arg17[%c0_41, %c0_42, %c0_43] : memref<1x8x128xf32, #tpu.memory_space<vmem>>, vector<1x8x128xf32>
      tpu.vector_store %arg17[%c0_41, %c0_42, %c0_43], %70 {strides = array<i32>} : memref<1x8x128xf32, #tpu.memory_space<vmem>>, vector<1x8x128xf32>,
    } else {
    }
    %c2_i32 = arith.constant 2 : i32
    %3 = arith.muli %arg0, %c2_i32 : i32
    %4 = arith.addi %3, %arg1 : i32
    %c512_i32 = arith.constant 512 : i32
    %5 = arith.muli %4, %c512_i32 : i32
    %6 = tpu.iota {dimensions = array<i32: 1>} : vector<2x512xi32>
    %7 = vector.broadcast %5 : i32 to vector<2x512xi32>
    %8 = arith.addi %6, %7 : vector<2x512xi32>
    %c0 = arith.constant 0 : index
    %c0_1 = arith.constant 0 : index
    %9 = vector.load %arg10[%c0, %c0_1] : memref<2x1xi32, #tpu.memory_space<vmem>>, vector<2x1xi32>
    %10 = vector.broadcast %9 : vector<2x1xi32> to vector<2x512xi32>
    %11 = arith.cmpi slt, %8, %10 : vector<2x512xi32>
    %c0_2 = arith.constant 0 : index
    %c0_3 = arith.constant 0 : index
    %12 = vector.load %arg2[%c0_2, %c0_3] : memref<2x512xf32, #tpu.memory_space<vmem>>, vector<2x512xf32>
    %c0_4 = arith.constant 0 : index
    %c0_5 = arith.constant 0 : index
    %13 = vector.load %arg3[%c0_4, %c0_5] : memref<2x512xf32, #tpu.memory_space<vmem>>, vector<2x512xf32>
    %14 = arith.subf %12, %13 : vector<2x512xf32>
    %c0_6 = arith.constant 0 : index
    %c0_7 = arith.constant 0 : index
    %15 = vector.load %arg18[%c0_6, %c0_7] : memref<2x512xf32, #tpu.memory_space<vmem>>, vector<2x512xf32>
    %16 = math.absf %14 : vector<2x512xf32>
    %cst = arith.constant 0.000000e+00 : f32
    %17 = vector.broadcast %cst : f32 to vector<2x512xf32>
    %18 = arith.select %11, %16, %17 : vector<2x512xi1>, vector<2x512xf32>
    %19 = arith.addf %15, %18 : vector<2x512xf32>
    %c0_8 = arith.constant 0 : index
    %c0_9 = arith.constant 0 : index
    %20 = vector.load %arg18[%c0_8, %c0_9] : memref<2x512xf32, #tpu.memory_space<vmem>>, vector<2x512xf32>
    tpu.vector_store %arg18[%c0_8, %c0_9], %19 {strides = array<i32>} : memref<2x512xf32, #tpu.memory_space<vmem>>, vector<2x512xf32>,
    %c1_i32 = arith.constant 1 : i32
    %21 = arith.cmpi eq, %arg1, %c1_i32 : i32
    %22 = arith.extui %21 : i1 to i32
    %c0_i32_10 = arith.constant 0 : i32
    %23 = arith.cmpi ne, %22, %c0_i32_10 : i32
    scf.if %23 {
      %c0_11 = arith.constant 0 : index
      %c0_12 = arith.constant 0 : index
      %24 = vector.load %arg18[%c0_11, %c0_12] : memref<2x512xf32, #tpu.memory_space<vmem>>, vector<2x512xf32>
      %cst_13 = arith.constant dense<0.000000e+00> : vector<2xf32>
      %25 = vector.multi_reduction <add>, %24, %cst_13 [1] : vector<2x512xf32> to vector<2xf32>
      %26 = vector.shape_cast %25 : vector<2xf32> to vector<2x1xf32>
      %c0_14 = arith.constant 0 : index
      %c0_15 = arith.constant 0 : index
      %27 = vector.load %arg11[%c0_14, %c0_15] : memref<2x1xf32, #tpu.memory_space<vmem>>, vector<2x1xf32>
      %28 = arith.mulf %26, %27 : vector<2x1xf32>
      %29 = vector.shape_cast %28 : vector<2x1xf32> to vector<1x2x1xf32>
      %cst_16 = arith.constant dense<0.000000e+00> : vector<1xf32>
      %30 = vector.multi_reduction <add>, %29, %cst_16 [1, 2] : vector<1x2x1xf32> to vector<1xf32>
      %31 = vector.shape_cast %30 : vector<1xf32> to vector<1x1x1xf32>
      %32 = vector.extract %31[0, 0, 0] : f32 from vector<1x1x1xf32>
      %cst_17 = arith.constant 1.562500e-02 : f32
      %33 = arith.mulf %32, %cst_17 : f32
      %34 = vector.broadcast %33 : f32 to vector<1x8x128xf32>
      %c0_18 = arith.constant 0 : index
      %c0_19 = arith.constant 0 : index
      %c0_20 = arith.constant 0 : index
      %35 = vector.load %arg14[%c0_18, %c0_19, %c0_20] : memref<1x8x128xf32, #tpu.memory_space<vmem>>, vector<1x8x128xf32>
      tpu.vector_store %arg14[%c0_18, %c0_19, %c0_20], %34 {strides = array<i32>} : memref<1x8x128xf32, #tpu.memory_space<vmem>>, vector<1x8x128xf32>,
    } else {
    }
    return
  }
  func.func @transform_0(%arg0: i32, %arg1: i32) -> (i32, i32) {
    %c2_i32 = arith.constant 2 : i32
    %0 = arith.muli %arg0, %c2_i32 : i32
    %1 = arith.addi %0, %arg1 : i32
    %c2_i32_0 = arith.constant 2 : i32
    %2 = arith.minsi %1, %c2_i32_0 : i32
    %c0_i32 = arith.constant 0 : i32
    %c0_i32_1 = arith.constant 0 : i32
    return %c0_i32, %2 : i32, i32
  }
  func.func @transform_1(%arg0: i32, %arg1: i32) -> (i32, i32) {
    %c2_i32 = arith.constant 2 : i32
    %0 = arith.muli %arg0, %c2_i32 : i32
    %1 = arith.addi %0, %arg1 : i32
    %c2_i32_0 = arith.constant 2 : i32
    %2 = arith.minsi %1, %c2_i32_0 : i32
    %c0_i32 = arith.constant 0 : i32
    %c0_i32_1 = arith.constant 0 : i32
    return %c0_i32, %2 : i32, i32
  }
  func.func @transform_2(%arg0: i32, %arg1: i32) -> (i32, i32) {
    %c0_i32 = arith.constant 0 : i32
    %c0_i32_0 = arith.constant 0 : i32
    %c0_i32_1 = arith.constant 0 : i32
    return %c0_i32, %c0_i32_0 : i32, i32
  }
  func.func @transform_3(%arg0: i32, %arg1: i32) -> (i32, i32) {
    %c0_i32 = arith.constant 0 : i32
    %c0_i32_0 = arith.constant 0 : i32
    %c0_i32_1 = arith.constant 0 : i32
    return %c0_i32, %c0_i32_0 : i32, i32
  }
  func.func @transform_4(%arg0: i32, %arg1: i32) -> (i32, i32) {
    %c0_i32 = arith.constant 0 : i32
    %c0_i32_0 = arith.constant 0 : i32
    %c0_i32_1 = arith.constant 0 : i32
    return %c0_i32, %c0_i32_0 : i32, i32
  }
  func.func @transform_5(%arg0: i32, %arg1: i32) -> (i32, i32) {
    %c0_i32 = arith.constant 0 : i32
    %c0_i32_0 = arith.constant 0 : i32
    %c0_i32_1 = arith.constant 0 : i32
    return %c0_i32, %c0_i32_0 : i32, i32
  }
  func.func @transform_6(%arg0: i32, %arg1: i32) -> (i32, i32) {
    %c0_i32 = arith.constant 0 : i32
    %c0_i32_0 = arith.constant 0 : i32
    %c0_i32_1 = arith.constant 0 : i32
    return %c0_i32, %c0_i32_0 : i32, i32
  }
  func.func @transform_7(%arg0: i32, %arg1: i32) -> (i32, i32) {
    %c0_i32 = arith.constant 0 : i32
    %c0_i32_0 = arith.constant 0 : i32
    %c0_i32_1 = arith.constant 0 : i32
    return %c0_i32, %c0_i32_0 : i32, i32
  }
  func.func @transform_8(%arg0: i32, %arg1: i32) -> (i32, i32) {
    %c0_i32 = arith.constant 0 : i32
    %c0_i32_0 = arith.constant 0 : i32
    %c0_i32_1 = arith.constant 0 : i32
    return %c0_i32, %c0_i32_0 : i32, i32
  }
  func.func @transform_9(%arg0: i32, %arg1: i32) -> (i32, i32) {
    %c0_i32 = arith.constant 0 : i32
    %c0_i32_0 = arith.constant 0 : i32
    %c0_i32_1 = arith.constant 0 : i32
    return %c0_i32, %c0_i32_0 : i32, i32
  }
  func.func @transform_10(%arg0: i32, %arg1: i32) -> (i32, i32) {
    %c0_i32 = arith.constant 0 : i32
    %c0_i32_0 = arith.constant 0 : i32
    %c0_i32_1 = arith.constant 0 : i32
    return %c0_i32, %c0_i32_0 : i32, i32
  }
  func.func @transform_11(%arg0: i32, %arg1: i32) -> (i32, i32) {
    %c0_i32 = arith.constant 0 : i32
    %c0_i32_0 = arith.constant 0 : i32
    %c0_i32_1 = arith.constant 0 : i32
    return %c0_i32, %c0_i32_0 : i32, i32
  }
  func.func @transform_12(%arg0: i32, %arg1: i32) -> (i32, i32, i32) {
    %c0_i32 = arith.constant 0 : i32
    %c0_i32_0 = arith.constant 0 : i32
    %c0_i32_1 = arith.constant 0 : i32
    return %arg0, %c0_i32, %c0_i32_0 : i32, i32, i32
  }
  func.func @transform_13(%arg0: i32, %arg1: i32) -> (i32, i32, i32) {
    %c0_i32 = arith.constant 0 : i32
    %c0_i32_0 = arith.constant 0 : i32
    %c0_i32_1 = arith.constant 0 : i32
    return %arg0, %c0_i32, %c0_i32_0 : i32, i32, i32
  }
  func.func @transform_14(%arg0: i32, %arg1: i32) -> (i32, i32, i32) {
    %c0_i32 = arith.constant 0 : i32
    %c0_i32_0 = arith.constant 0 : i32
    %c0_i32_1 = arith.constant 0 : i32
    return %arg0, %c0_i32, %c0_i32_0 : i32, i32, i32
  }
  func.func @transform_15(%arg0: i32, %arg1: i32) -> (i32, i32, i32) {
    %c0_i32 = arith.constant 0 : i32
    %c0_i32_0 = arith.constant 0 : i32
    %c0_i32_1 = arith.constant 0 : i32
    return %arg0, %c0_i32, %c0_i32_0 : i32, i32, i32
  }
}

</mosaic_0001>

<bundles_post_ra>
// kernel: tpu_custom_call.1
= control target key start
LH: loop header
LB: loop body
LE: loop exit
PB: predicated region body
PF: predicated region fallthrough
CT: control target
= control target key end

     0   :  { %s2076_s0 = inlined_call_operand.hbm [shape: f32[2,1280], index: 0, kind: input, shape index: {}]   ;;  %s2077_s1 = inlined_call_operand.hbm [shape: f32[2,1280], index: 1, kind: input, shape index: {}]   ;;  %s2078_s2 = inlined_call_operand.vmem [shape: f32[2,8], index: 2, kind: input, shape index: {}]   ;;  %s2079_s3 = inlined_call_operand.vmem [shape: s32[2,8], index: 3, kind: input, shape index: {}]   ;;  %s2080_s4 = inlined_call_operand.vmem [shape: f32[2,8], index: 4, kind: input, shape index: {}]   ;;  %s2081_s5 = inlined_call_operand.vmem [shape: f32[2,8], index: 5, kind: input, shape index: {}]   ;;  %s2082_s6 = inlined_call_operand.vmem [shape: f32[2,8], index: 6, kind: input, shape index: {}]   ;;  %s2083_s7 = inlined_call_operand.vmem [shape: f32[2,8], index: 7, kind: input, shape index: {}]   ;;  %s2084_s8 = inlined_call_operand.vmem [shape: s32[2,1], index: 8, kind: input, shape index: {}]   ;;  %s2085_s9 = inlined_call_operand.vmem [shape: f32[2,1], index: 9, kind: input, shape index: {}]   ;;  %s2086_s10 = inlined_call_operand.vmem [shape: s32[2,1], index: 10, kind: input, shape index: {}]   ;;  %s2087_s11 = inlined_call_operand.vmem [shape: f32[2,1], index: 11, kind: input, shape index: {}]   ;;  %s2088_s12 = inlined_call_operand.hbm [shape: f32[2,8,128], index: 12, kind: output, shape index: {0}]   ;;  %s2089_s13 = inlined_call_operand.hbm [shape: f32[2,8,128], index: 13, kind: output, shape index: {1}]   ;;  %s2090_s14 = inlined_call_operand.hbm [shape: f32[2,8,128], index: 14, kind: output, shape index: {2}]   ;;  %s2091_s15 = inlined_call_operand.hbm [shape: f32[2,8,128], index: 15, kind: output, shape index: {3}]  }
   0x1   :  { %2108 = sst [smem:[#allocation30_spill]] %s2076_s0 }
   0x2   :  { %2109 = sst [smem:[#allocation31_spill]] %s2077_s1 }
   0x3   :  { %2110 = sst [smem:[#allocation32_spill]] %s2080_s4 }
   0x4   :  { %2111 = sst [smem:[#allocation33_spill]] %s2081_s5 }
   0x5   :  { %2112 = sst [smem:[#allocation34_spill]] %s2084_s8 }
   0x6   :  { %2113 = sst [smem:[#allocation35_spill]] %s2085_s9 }
   0x7   :  { %2114 = sst [smem:[#allocation36_spill]] %s2088_s12 }
   0x8   :  { %2115 = sst [smem:[#allocation37_spill]] %s2089_s13 }
   0x9   :  { %2116 = sst [smem:[#allocation38_spill]] %s2090_s14 }
   0xa   :  { %2117 = sst [smem:[#allocation39_spill]] %s2091_s15 }
   0xb   :  { %21 = vsyncpa [#allocation4], 0 }
   0xc   :  { %23 = vsyncpa [#allocation4 + $0x1], 0 }
   0xd   :  { %24 = vsyncpa [#allocation7], 0 }
   0xe   :  { %26 = vsyncpa [#allocation7 + $0x1], 0 }
   0xf   :  { %27 = vsyncpa [#allocation5], 0 }
  0x10   :  { %29 = vsyncpa [#allocation5 + $0x1], 0 }
  0x11   :  { %30 = vsyncpa [#allocation10], 0 }
  0x12   :  { %32 = vsyncpa [#allocation10 + $0x1], 0 }
  0x13   :  { %33 = vsyncpa [#allocation13], 0 }
  0x14   :  { %35 = vsyncpa [#allocation13 + $0x1], 0  ;;  %s1654_s18 = smov 0   ;;  %s1656_s19 = smov 0  }
  0x15   :  { %s1658_s20 = smov 0   ;;  %s1660_s21 = smov 0  }
  0x16   :  { %s1662_s22 = smov 0   ;;  %s1664_s23 = smov 0  }
  0x17   :  { %s1666_s24 = smov 0   ;;  %s1668_s25 = smov 0  }
  0x18   :  { %s1670_s26 = smov 0   ;;  %s1672_s27 = smov 0  }
  0x19   :  { %s1674_s28 = smov 0  }
  0x1a LB: > { %2118 = sst [smem:[#allocation19_spill]] %s1522_s18  ;;  %s1710_s29 = sadd.s32 4294967295, %s1562_s28   ;;  %s1562_s28 = sphi %s1674_s28, %s41_s28   ;;  %s1558_s27 = sphi %s1672_s27, %s2168_s27   ;;  %s1554_s26 = sphi %s1670_s26, %s2167_s26   ;;  %s1550_s25 = sphi %s1668_s25, %s2166_s25   ;;  %s1546_s24 = sphi %s1666_s24, %s2165_s24   ;;  %s1542_s23 = sphi %s1664_s23, %s2173_s23   ;;  %s1538_s22 = sphi %s1662_s22, %s2172_s22   ;;  %s1534_s21 = sphi %s1660_s21, %s2171_s21   ;;  %s1530_s20 = sphi %s1658_s20, %s2163_s20   ;;  %s1526_s19 = sphi %s1656_s19, %s2170_s19   ;;  %s1522_s18 = sphi %s1654_s18, %s2169_s18  }
  0x1b   : > { %2119 = sst [smem:[#allocation20_spill]] %s1530_s20  ;;  %s50_s16 = sadd.s32 1, %s1554_s26 }
  0x1c   : > { %2120 = sst [smem:[#allocation21_spill]] %s1550_s25  ;;  %s53_s17 = sadd.s32 1, %s1558_s27 }
  0x1d   : > { %2121 = sst [smem:[#allocation22_spill]] %s1554_s26  ;;  %p51_p0 = scmp.ge.s32.totalorder %s50_s16, 2 }
  0x1e   : > { %2122 = sst [smem:[#allocation23_spill]] %s1558_s27  ;;  %s1114_s15 = sshll.u32 %s1558_s27, 1 }
  0x1f   : > { %s58_s14 = sadd.s32 %s1554_s26, %s1114_s15  ;;  %s68_s12 = sadd.s32 1, %s1542_s23 }
  0x20   : > { %s2175_s16 = smov (%p51_p0, %s50_s16), 0  ;;  %s2177_s17 = smov (!%p51_p0, %s53_s17), %s1558_s27 }
  0x21   : > { %2123 = sst [smem:[#allocation24_spill]] %s2175_s16  ;;  %p59_p1 = scmp.lt.s32.totalorder %s58_s14, 2 }
  0x22   : > { %p75_p2 = scmp.ne.s32.totalorder %s1542_s23, %s1538_s22  ;;  %p55_p3 = scmp.ge.s32.totalorder %s2177_s17, 2 }
  0x23   : > { %p76_p4 = scmp.eq.s32.totalorder %s1562_s28, 0  ;;  %s2179_s14 = smov (!%p59_p1, %s58_s14), 2 }
  0x24   : > { %s2181_s17 = smov (%p55_p3, %s2177_s17), 0  ;;  %p81_p6 = scmp.ne.s32.totalorder %s1538_s22, %s1534_s21 }
  0x25   : > { %2124 = sst [smem:[#allocation25_spill]] %s2181_s17  ;;  %p1728_p5 = por %p76_p4, %p75_p2 }
  0x26   : > { %s1115_s30 = sshll.u32 %s2181_s17, 1  ;;  %p82_p7 = scmp.eq.s32.totalorder %s1710_s29, 0 }
  0x27   : > { %s2125_s15 = scalar_select %p1728_p5, 1, 0 }
  0x28   : > { %s62_s26 = sadd.s32 %s1115_s30, %s2175_s16  ;;  %s335_s13 = ssub.s32 %s1558_s27, %s2181_s17 }
  0x29   : > { %p63_p8 = scmp.lt.s32.totalorder %s62_s26, 2  ;;  %p1739_p9 = por %p82_p7, %p81_p6 }
  0x2a   : > { %p336_p10 = scmp.eq.s32.totalorder %s335_s13, 0  ;;  %s338_s25 = sadd.s32 1, %s1530_s20 }
  0x2b   : > { %s2126_s9 = scalar_select %p1739_p9, 1, 0 }
  0x2c   : > { %s2183_s26 = smov (!%p63_p8, %s62_s26), 2  ;;  %p348_p11 = scmp.ne.s32.totalorder %s1530_s20, %s1526_s19 }
  0x2d   : > { %s1745_s8 = scalar_select %p336_p10, %s1530_s20, %s338_s25  }
  0x2e   : > { %s65_s5 = ssub.s32 %s2179_s14, %s2183_s26  ;;  %p349_p13 = scmp.eq.s32.totalorder %s1710_s29, 3 }
  0x2f   : > { %2127 = sst [smem:[#allocation26_spill]] %s1745_s8  ;;  %p66_p12 = scmp.eq.s32.totalorder %s65_s5, 0 }
  0x30   : > { %p354_p0 = scmp.ne.s32.totalorder %s1526_s19, %s1522_s18  ;;  %s2128_s21 = sadd.s32 4294967294, %s1562_s28  }
  0x31   : > { %p355_p1 = scmp.eq.s32.totalorder %s2128_s21, 3  ;;  %p1758_p2 = por %p349_p13, %p348_p11 }
  0x32   : > { %s1756_s4 = scalar_select %p66_p12, %s1542_s23, %s68_s12  }
  0x33   : > { %s2130_s30 = scalar_select %p1758_p2, 1, 0 }
  0x34   : > { %2129 = sst [smem:[#allocation27_spill]] %s1756_s4  ;;  %p1762_p3 = por %p355_p1, %p354_p0 }
  0x35   : > { %2131 = sst [smem:[#allocation28_spill]] %s2130_s30  ;;  %p1119_p4 = scmp.ge.s32.totalorder %s1562_s28, 4 }
  0x36   : > { %s2132_s17 = scalar_select %p1762_p3, 1, 0 }
  0x37   : > { %479 = sbr.rel (%p1119_p4) target bundleno = 142 (0x8e), region = 56 }
  0x38   : > { %2133 = sst [smem:[#allocation29_spill]] %s2132_s17 }
  0x3e   : > { %482 = sbr.rel (!%p1728_p5) target bundleno = 101 (0x65), region = 60  ;;  %s483_s5 = sand.u32 (%p1728_p5), 1, %s1542_s23  }
  0x3f   : > { %s1122_s13 = sshll.u32 (%p1728_p5), %s2179_s14, 2  ;;  %s1120_s12 = sshll.u32 (%p1728_p5), %s483_s5, 3 }
  0x40   : > { %s493_s25 = ssub.s32 (%p1728_p5), 10, %s1122_s13  ;;  %s1774_s16 = scalar_lea.sflag (%p1728_p5), [#allocation4], %s483_s5 }
  0x41   : > { %p494_p6 = scmp.lt.s32.totalorder (%p1728_p5), %s493_s25, 4  ;;  %s487_s27 = scalar_lea.vmem (%p1728_p5), [#allocation3], %s1120_s12 }
  0x45   : > { %s2185_s25 = smov (!%p494_p6, %s493_s25), 4 }
  0x46   : > { %s1771_s26 = sshll.u32 %s2185_s25, 5 }
  0x47   : > { %s498_s21 = ssub.s32 128, %s1771_s26 }
  0x48   : > { %499 = vsyncadd %s1774_s16, %s498_s21  ;;  %p1124_p7 = scmp.ne.s32.totalorder %s1771_s26, 0  ;;  %s1157_s4 = sshll.u32 %s2179_s14, 7 }
  0x49   : > { %s2134_s0 = sld [smem:[#allocation30_spill]]  ;;  %s505_s5 = sshll.u32 %s487_s27, 4  ;;  %s506_s5 = int_to_ptr.vmem [resolvable:$true] %s505_s5 }
  0x4f   : > { %s1782_s13 = scalar_lea.hbm %s2134_s0, %s1157_s4  ;;  %s1292_s17 = scalar_lea.hbm %s2134_s0, 320 }
  0x50   : > { %s1288_s25 = scalar_lea.hbm %s1782_s13, %s1771_s26  ;;  %p1293_p12 = scmp.lt.u32.totalorder %s1782_s13, %s2134_s0 }
  0x51   : > { %p1289_p8 = scmp.ne.s32.totalorder %s1782_s13, %s1288_s25  ;;  %p1294_p13 = scmp.lt.u32.totalorder %s1292_s17, %s1288_s25 }
  0x52   : > { %p1296_p1 = scmp.lt.u32.totalorder %s1288_s25, %s1782_s13 }
  0x53   : > { %p1290_p10 = pnand %p1289_p8, %p1124_p7  ;;  %p1295_p0 = por %p1294_p13, %p1293_p12 }
  0x55   : > { %p1291_p11 = pneg %p1290_p10  ;;  %p1297_p4 = por %p1296_p1, %p1295_p0 }
  0x57   : > { %p1298_p6 = pnand %p1297_p4, %p1291_p11 }
  0x59   : > { %1301 = shalt.err (!%p1298_p6)
}
  0x5a   : > { %s1302_s4 = scalar_lea.vmem %s506_s5, %s1771_s26  ;;  %s1564_s8 = smov [#allocation3]  }
  0x5b   : > { %p1303_p3 = scmp.ne.s32.totalorder %s506_s5, %s1302_s4  ;;  %s1306_s20 = sshll.u32 %s1564_s8, 4  ;;  %s1307_s20 = int_to_ptr.vmem [resolvable:$false] %s1306_s20 }
  0x5c   : > { %s1308_s27 = scalar_lea.vmem %s1307_s20, 256  ;;  %p1309_p2 = scmp.lt.s32.totalorder %s506_s5, %s1307_s20 }
  0x5d   : > { %p1304_p8 = pnand %p1303_p3, %p1124_p7  ;;  %p1310_p9 = scmp.lt.s32.totalorder %s1308_s27, %s1302_s4 }
  0x5f   : > { %p1305_p10 = pneg %p1304_p8  ;;  %p1311_p5 = por %p1310_p9, %p1309_p2 }
  0x61   : > { %p1312_p12 = pnand %p1311_p5, %p1305_p10 }
  0x63   : > { %1315 = shalt.err (!%p1312_p12)
}
  0x64   : > { %508 = dma.hbm_to_vmem [thread:$0]  (%p1124_p7), %s1782_s13, %s1771_s26, %s506_s5, %s1774_s16  }
  0x65 PF: > { %p2135_p11 = scmp.ne.s32.totalorder %s2125_s15, 0 }
  0x66   : > { %s512_s18 = sand.u32 (%p2135_p11), 1, %s1542_s23   ;;  %s1130_s17 = sshll.u32 (%p2135_p11), %s2179_s14, 2 }
  0x67   : > { %511 = sbr.rel (!%p2135_p11) target bundleno = 142 (0x8e), region = 64  ;;  %s1128_s30 = sshll.u32 (%p2135_p11), %s512_s18, 3 }
  0x68   : > { %s522_s25 = ssub.s32 (%p2135_p11), 10, %s1130_s17  ;;  %s1812_s4 = scalar_lea.sflag (%p2135_p11), [#allocation7], %s512_s18 }
  0x69   : > { %p523_p3 = scmp.lt.s32.totalorder (%p2135_p11), %s522_s25, 4  ;;  %s516_s16 = scalar_lea.vmem (%p2135_p11), [#allocation6], %s1128_s30 }
  0x6e   : > { %s2187_s25 = smov (!%p523_p3, %s522_s25), 4 }
  0x6f   : > { %s1809_s12 = sshll.u32 %s2187_s25, 5 }
  0x70   : > { %s527_s21 = ssub.s32 128, %s1809_s12 }
  0x71   : > { %528 = vsyncadd %s1812_s4, %s527_s21  ;;  %p1132_p5 = scmp.ne.s32.totalorder %s1809_s12, 0  ;;  %s1158_s15 = sshll.u32 %s2179_s14, 7 }
  0x72   : > { %s2136_s1 = sld [smem:[#allocation31_spill]]  ;;  %s534_s8 = sshll.u32 %s516_s16, 4  ;;  %s535_s8 = int_to_ptr.vmem [resolvable:$true] %s534_s8 }
  0x78   : > { %s1820_s5 = scalar_lea.hbm %s2136_s1, %s1158_s15  ;;  %s1320_s14 = scalar_lea.hbm %s2136_s1, 320 }
  0x79   : > { %s1316_s20 = scalar_lea.hbm %s1820_s5, %s1809_s12  ;;  %p1321_p13 = scmp.lt.u32.totalorder %s1820_s5, %s2136_s1 }
  0x7a   : > { %p1317_p9 = scmp.ne.s32.totalorder %s1820_s5, %s1316_s20  ;;  %p1322_p0 = scmp.lt.u32.totalorder %s1320_s14, %s1316_s20 }
  0x7b   : > { %p1324_p4 = scmp.lt.u32.totalorder %s1316_s20, %s1820_s5 }
  0x7c   : > { %p1318_p2 = pnand %p1317_p9, %p1132_p5  ;;  %p1323_p1 = por %p1322_p0, %p1321_p13 }
  0x7e   : > { %p1319_p7 = pneg %p1318_p2  ;;  %p1325_p6 = por %p1324_p4, %p1323_p1 }
  0x80   : > { %p1326_p8 = pnand %p1325_p6, %p1319_p7 }
  0x82   : > { %1329 = shalt.err (!%p1326_p8)
}
  0x83   : > { %s1330_s25 = scalar_lea.vmem %s535_s8, %s1809_s12  ;;  %s1565_s21 = smov [#allocation6]  }
  0x84   : > { %p1331_p10 = scmp.ne.s32.totalorder %s535_s8, %s1330_s25  ;;  %s1334_s16 = sshll.u32 %s1565_s21, 4  ;;  %s1335_s16 = int_to_ptr.vmem [resolvable:$false] %s1334_s16 }
  0x85   : > { %s1336_s15 = scalar_lea.vmem %s1335_s16, 256  ;;  %p1337_p3 = scmp.lt.s32.totalorder %s535_s8, %s1335_s16 }
  0x86   : > { %p1332_p12 = pnand %p1331_p10, %p1132_p5  ;;  %p1338_p9 = scmp.lt.s32.totalorder %s1336_s15, %s1330_s25 }
  0x88   : > { %p1333_p11 = pneg %p1332_p12  ;;  %p1339_p2 = por %p1338_p9, %p1337_p3 }
  0x8a   : > { %p1340_p0 = pnand %p1339_p2, %p1333_p11 }
  0x8c   : > { %1343 = shalt.err (!%p1340_p0)
}
  0x8d   : > { %537 = dma.hbm_to_vmem [thread:$0]  (%p1132_p5), %s1820_s5, %s1809_s12, %s535_s8, %s1812_s4  }
  0x8e PF: > { %p1136_p7 = scmp.ge.s32.totalorder %s1562_s28, 1  ;;  %p539_p13 = scmp.lt.s32.totalorder %s1562_s28, 5 }
  0x90   : > { %p540_p1 = pnand %p1136_p7, %p539_p13 }
  0x91   : > { %s545_s26 = sand.u32 (!%p540_p1), 1, %s1538_s22   ;;  %p2137_p4 = scmp.ne.s32.totalorder (!%p540_p1), %s2126_s9, 0 }
  0x92   : > { %543 = sbr.rel (%p540_p1) target bundleno = 1125 (0x465), region = 68  ;;  %s1137_s13 = sshll.u32 (!%p540_p1), %s545_s26, 3 }
  0x93   : > { %s546_s20 = scalar_lea.sflag (!%p540_p1), [#allocation4], %s545_s26  ;;  %s1846_s27 = scalar_lea.vmem (!%p540_p1), [#allocation3], %s1137_s13 }
  0x99   : > { %1501 = dma.done.wait (%p2137_p4), %s546_s20, 128  }
  0x9a   : > { %1503 = vsyncadd (%p2137_p4), %s546_s20, 4294967168  ;;  %s555_s12 = scalar_lea.sflag [#allocation7], %s545_s26  ;;  %s1852_s4 = scalar_lea.vmem [#allocation6], %s1137_s13 }
  0x9b   : > { %1505 = dma.done.wait (%p2137_p4), %s555_s12, 128  }
  0x9c   : > { %1507 = vsyncadd (%p2137_p4), %s555_s12, 4294967168  ;;  %s1859_s5 = sand.u32 1, %s1526_s19   ;;  %p1143_p5 = scmp.ne.s32.totalorder %s1546_s24, 0 }
  0x9d   : > { %s1862_s8 = sshll.u32 %s1859_s5, 3  ;;  %v648_v0 = vld [vmem:[%s2086_s10] sm:$0x3] (!%p1143_p5)  ;;  %v1566_v1 = vmov (!%p1143_p5), 0   ;;  %v650_v11 = vlaneseq (!%p1143_p5)  ;;  %s2138_s26 = sld [smem:[#allocation32_spill]] (!%p1143_p5)  ;;  %vm671_vm1 = vcmask (!%p1143_p5), 58368  }
  0x9e   : > { %s610_s14 = scalar_lea.vmem [#allocation9], %s1862_s8  ;;  %646 = sbr.rel (%p1143_p5) target bundleno = 506 (0x1fa), region = 80  ;;  %1283 = vset.pattern.permute.xlu0 (!%p1143_p5), %v1566_v1  ;;  %v649_v2 = vld [vmem:[%s2087_s11] sm:$0x3] (!%p1143_p5)  ;;  %v1567_v30 = vmov (!%p1143_p5), 0.0  }
  0x9f   : > { %653 = vperm.xlu0 (!%p1143_p5), %1283, %v648_v0   ;;  %v662_v3 = vld [vmem:[%s2079_s3] sm:$0x3] (!%p1143_p5)  ;;  %s2139_s17 = sld [smem:[#allocation33_spill]] (!%p1143_p5)  ;;  %v651_v16 = vand.u32 (!%p1143_p5), 127, %v650_v11  ;;  %647 = vst [vmem:[#allocation2] sm:$0xff] (!%p1143_p5), %v1567_v30  ;;  %s2140_s13 = scalar_lea.vmem (!%p1143_p5), [#allocation11], %s1862_s8 }
  0xa0   : > { %v663_v4 = vcvt.s32.f32 (!%p1143_p5), %v662_v3  ;;  %v701_v8 = vld [vmem:[%s2082_s6] sm:$0x3] (!%p1143_p5)  ;;  %s2141_s20 = scalar_lea.vmem (!%p1143_p5), [#allocation12], %s1862_s8 }
  0xa1   : > { %v702_v9 = vld [vmem:[%s2083_s7] sm:$0x3] (!%p1143_p5) }
  0xa2   : > { %v664_v5 = vadd.f32 (!%p1143_p5), 1.0, %v663_v4  ;;  %v667_v10 = vld [vmem:[%s2078_s2] sm:$0x3] (!%p1143_p5)  ;;  %v703_v14 = vsub.f32 (!%p1143_p5), %v701_v8, %v702_v9 }
  0xa3   : > { %658 = vperm.xlu0 (!%p1143_p5), %1283, %v649_v2   ;;  %v684_v12 = vld [vmem:[%s2138_s26] sm:$0x3] (!%p1143_p5) }
  0xa4   : > { %1284 = vlog2.f32 (!%p1143_p5), %v664_v5  ;;  %v704_v19 = vmul.f32 (!%p1143_p5), %v703_v14, %v703_v14 }
  0xa5   : > { %v685_v13 = vld [vmem:[%s2139_s17] sm:$0x3] }
  0xa6   : > { %v686_v18 = vsub.f32 %v684_v12, %v685_v13 }
  0xa8   : > { %v687_v22 = vmul.f32 %v686_v18, %v686_v18 }
  0xae   : > { %v1285_v6 = vpop.eup %1284 }
  0xaf   : > { %v666_v7 = vmul.f32 0.6931472, %v1285_v6 }
  0xb1   : > { %v668_v15 = vsub.f32 %v667_v10, %v666_v7 }
  0xb3   : > { %v669_v20 = vmul.f32 %v668_v15, %v668_v15 }
 0x11e   : > { %v654_v17 = vpop.permute.xlu0 %653 }
 0x11f   : > { %vm655_vm0 = vcmp.lt.s32.totalorder %v651_v16, %v654_v17 }
 0x122   : > { %v659_v21 = vpop.permute.xlu0 %658 }
 0x123   : > { %v661_v23 = vsel %vm655_vm0, %v659_v21, 0.0 }
 0x124   : > { %v705_v24 = vmul.f32 %v704_v19, %v661_v23  ;;  %v670_v25 = vmul.f32 %v669_v20, %v661_v23  ;;  %v688_v28 = vmul.f32 %v687_v22, %v661_v23 }
 0x126   : > { %v706_v26 = vsel %vm671_vm1, %v705_v24, 0.0  ;;  %v672_v27 = vsel %vm671_vm1, %v670_v25, 0.0  ;;  %v689_v29 = vsel %vm671_vm1, %v688_v28, 0.0 }
 0x127   : > { %707 = vadd.xlane.f32.xlu0 %v706_v26  ;;  %673 = vadd.xlane.f32.xlu1 %v672_v27 }
 0x12b   : > { %690 = vadd.xlane.f32.xlu1 %v689_v29 }
 0x1b4   : > { %v708_v31 = vpop.xlane.xlu0 %707  ;;  %v674_v32 = vpop.xlane.xlu1 %673 }
 0x1b5   : > { %v709_v33 = vrot.slane %v708_v31, 4  ;;  %v675_v34 = vrot.slane %v674_v32, 4 }
 0x1b7   : > { %v710_v35 = vadd.f32 %v709_v33, %v708_v31  ;;  %v676_v36 = vadd.f32 %v675_v34, %v674_v32 }
 0x1b8   : > { %v691_v37 = vpop.xlane.xlu1 %690 }
 0x1b9   : > { %v711_v38 = vrot.slane %v710_v35, 2  ;;  %v677_v39 = vrot.slane %v676_v36, 2  ;;  %v692_v40 = vrot.slane %v691_v37, 4 }
 0x1bb   : > { %v693_v41 = vadd.f32 %v692_v40, %v691_v37  ;;  %v678_v42 = vadd.f32 %v677_v39, %v676_v36  ;;  %v712_v43 = vadd.f32 %v711_v38, %v710_v35 }
 0x1bd   : > { %v694_v44 = vrot.slane %v693_v41, 2  ;;  %v679_v45 = vrot.slane %v678_v42, 1  ;;  %v713_v48 = vrot.slane %v712_v43, 1 }
 0x1bf   : > { %v695_v46 = vadd.f32 %v694_v44, %v693_v41  ;;  %v680_v47 = vadd.f32 %v679_v45, %v678_v42  ;;  %v714_v51 = vadd.f32 %v713_v48, %v712_v43 }
 0x1c1   : > { %1159 = vpush %v680_v47  ;;  %v696_v49 = vrot.slane %v695_v46, 1 }
 0x1c3   : > { %v697_v50 = vadd.f32 %v696_v49, %v695_v46 }
 0x1c5   : > { %1161 = vpush %v697_v50 }
 0x1c6   : > { %1163 = vpush %v714_v51 }
 0x1f2   : > { %s1160_s18 = spop %1159 }
 0x1f3   : > { %v682_v52 = vstv %s1160_s18 }
 0x1f4   : > { %683 = vst [vmem:[%s610_s14] sm:$0xff] %v682_v52 }
 0x1f6   : > { %s1162_s17 = spop %1161 }
 0x1f7   : > { %v699_v53 = vstv %s1162_s17  ;;  %s1164_s30 = spop %1163 }
 0x1f8   : > { %700 = vst [vmem:[%s2140_s13] sm:$0xff] %v699_v53  ;;  %v716_v54 = vstv %s1164_s30 }
 0x1f9   : > { %717 = vst [vmem:[%s2141_s20] sm:$0xff] %v716_v54 }
 0x1fa PF: > { %s2142_s9 = sld [smem:[#allocation34_spill]]  ;;  %s2143_s21 = sld [smem:[#allocation21_spill]]  ;;  %v1568_v56 = vmov 0   ;;  %v739_v57 = vld [vmem:[%s1846_s27] sm:$0xff]  ;;  %v740_v58 = vld [vmem:[%s1852_s4] sm:$0xff]  ;;  %v721_v62 = vlaneseq }
 0x1fb   : > { %1286 = vset.pattern.permute.xlu0 %v1568_v56  ;;  %v741_v59 = vsub.f32 %v739_v57, %v740_v58  ;;  %v1569_v60 = vmov 1983009808   ;;  %v742_v26 = vld [vmem:[#allocation2] sm:$0xff]  ;;  %p1146_p6 = scmp.ne.s32.totalorder %s1546_s24, 1 }
 0x1fc   : > { %v747_v61 = vunpack.c.l.s4 %v1569_v60  ;;  %v750_v1 = vshrl.u32 %v721_v62, 7  ;;  %v722_v2 = vand.u32 127, %v721_v62  ;;  %vm821_vm6 = vcmask (!%p1146_p6), 1041408   ;;  %s2144_s18 = sld [smem:[#allocation35_spill]] (!%p1146_p6)  ;;  %s2145_s30 = scalar_lea.vmem (!%p1146_p6), [#allocation8], %s1862_s8 }
 0x1fd   : > { %v743_v63 = vand.u32 2147483647, %v741_v59  ;;  %vm833_vm7 = vcmask (!%p1146_p6), 1024  }
 0x1fe   : > { %v748_v0 = vunpack.c.0.s8 %v747_v61  ;;  %v723_v5 = vadd.s32 128, %v722_v2  ;;  %v724_v6 = vadd.s32 256, %v722_v2  ;;  %v725_v7 = vadd.s32 384, %v722_v2 }
 0x1ff   : > { %v745_v3 = vcombine.high %v743_v63, %v743_v63 }
 0x200   : > { %v731_v55 = vld [vmem:[%s2142_s9] sm:$0x3]  ;;  %s1144_s16 = sshll.u32 %s2143_s21, 1  ;;  %v751_v4 = vsub.s32 %v748_v0, %v750_v1 }
 0x201   : > { %733 = vperm.xlu0 %1286, %v731_v55   ;;  %s719_s15 = sadd.s32 %s1546_s24, %s1144_s16 }
 0x202   : > { %s1145_s26 = sshll.u32 %s719_s15, 9  ;;  %v752_v9 = vrot.slane %v743_v63, %v751_v4  ;;  %v759_v10 = vrot.slane %v745_v3, %v751_v4  ;;  %v831_v42 = vld [vmem:[%s2144_s18] sm:$0x3] (!%p1146_p6) }
 0x203   : > { %v726_v8 = vstv %s1145_s26 }
 0x204   : > { %v727_v11 = vadd.s32 %v726_v8, %v722_v2  ;;  %v728_v12 = vadd.s32 %v726_v8, %v723_v5  ;;  %v729_v13 = vadd.s32 %v726_v8, %v724_v6  ;;  %v730_v14 = vadd.s32 %v726_v8, %v725_v7 }
 0x205   : > { %v760_v15 = vcombine.high %v752_v9, %v752_v9  ;;  %v761_v16 = vcombine.high %v759_v10, %v759_v10 }
 0x280   : > { %v734_v17 = vpop.permute.xlu0 %733 }
 0x281   : > { %vm735_vm2 = vcmp.lt.s32.totalorder %v727_v11, %v734_v17  ;;  %vm736_vm3 = vcmp.lt.s32.totalorder %v728_v12, %v734_v17  ;;  %vm737_vm4 = vcmp.lt.s32.totalorder %v729_v13, %v734_v17  ;;  %vm738_vm5 = vcmp.lt.s32.totalorder %v730_v14, %v734_v17 }
 0x282   : > { %v766_v18 = vsel %vm735_vm2, %v752_v9, 0.0  ;;  %v767_v19 = vsel %vm736_vm3, %v760_v15, 0.0  ;;  %v768_v20 = vsel %vm737_vm4, %v759_v10, 0.0  ;;  %v769_v21 = vsel %vm738_vm5, %v761_v16, 0.0 }
 0x283   : > { %v774_v22 = vcombine.low %v766_v18, %v767_v19  ;;  %v775_v23 = vcombine.low %v768_v20, %v769_v21 }
 0x285   : > { %v782_v24 = vrot.slane %v774_v22, %v751_v4  ;;  %v789_v25 = vrot.slane %v775_v23, %v751_v4  ;;  %797 = sbr.rel (%p1146_p6) target bundleno = 1023 (0x3ff), region = 84 }
 0x287   : > { %v790_v27 = vcombine.low %v782_v24, %v789_v25 }
 0x289   : > { %v792_v28 = vadd.f32 %v790_v27, %v742_v26 }
 0x28b   : > { %793 = vst [vmem:[#allocation2] sm:$0xff] %v792_v28 }
 0x292   : > { %v798_v29 = vld [vmem:[#allocation2] sm:$0xff] }
 0x293   : > { %v800_v30 = vcombine.high %v798_v29, %v798_v29  ;;  %v807_v31 = vrot.slane %v798_v29, %v751_v4 }
 0x295   : > { %v814_v32 = vrot.slane %v800_v30, %v751_v4  ;;  %v815_v33 = vcombine.high %v807_v31, %v807_v31  ;;  %v822_v34 = vsel %vm821_vm6, %v807_v31, 0.0 }
 0x297   : > { %v816_v35 = vcombine.high %v814_v32, %v814_v32  ;;  %v823_v36 = vsel %vm821_vm6, %v815_v33, 0.0  ;;  %v825_v37 = vsel %vm821_vm6, %v814_v32, 0.0 }
 0x298   : > { %v824_v38 = vadd.f32 %v823_v36, %v822_v34 }
 0x299   : > { %v827_v39 = vsel %vm821_vm6, %v816_v35, 0.0 }
 0x29a   : > { %v826_v40 = vadd.f32 %v825_v37, %v824_v38 }
 0x29c   : > { %v828_v41 = vadd.f32 %v827_v39, %v826_v40 }
 0x29e   : > { %829 = vadd.xlane.f32.xlu0 %v828_v41 }
 0x32b   : > { %v830_v43 = vpop.xlane.xlu0 %829 }
 0x32c   : > { %v832_v44 = vmul.f32 %v831_v42, %v830_v43 }
 0x32e   : > { %v834_v45 = vsel %vm833_vm7, %v832_v44, 0.0 }
 0x32f   : > { %835 = vadd.xlane.f32.xlu0 %v834_v45 }
 0x3bc   : > { %v836_v46 = vpop.xlane.xlu0 %835 }
 0x3bd   : > { %v837_v47 = vrot.slane %v836_v46, 4 }
 0x3bf   : > { %v838_v48 = vadd.f32 %v837_v47, %v836_v46 }
 0x3c1   : > { %v839_v49 = vrot.slane %v838_v48, 2 }
 0x3c3   : > { %v840_v50 = vadd.f32 %v839_v49, %v838_v48 }
 0x3c5   : > { %v841_v51 = vrot.slane %v840_v50, 1 }
 0x3c7   : > { %v842_v52 = vadd.f32 %v841_v51, %v840_v50 }
 0x3c9   : > { %1165 = vpush %v842_v52 }
 0x3fa   : > { %s1166_s24 = spop %1165 }
 0x3fb   : > { %s844_s17 = smul.f32 0.015625, %s1166_s24 }
 0x3fd   : > { %v845_v53 = vstv %s844_s17 }
 0x3fe   : > { %846 = vst [vmem:[%s2145_s30] sm:$0xff] %v845_v53 }
 0x3ff PF: > { %s2146_s13 = sld [smem:[#allocation21_spill]]  ;;  %s2147_s20 = sld [smem:[#allocation28_spill]] }
 0x400   : > { %s852_s12 = sand.u32 1, %s1710_s29   ;;  %s2148_s16 = sld [smem:[#allocation37_spill]] }
 0x401   : > { %s889_s26 = sshll.u32 %s610_s14, 4  ;;  %s2149_s18 = sld [smem:[#allocation36_spill]]  ;;  %s1924_s26 = int_to_ptr.vmem [resolvable:$true] %s889_s26 }
 0x402   : > { %s1932_s24 = scalar_lea.sflag [#allocation10], %s852_s12  ;;  %s1344_s30 = scalar_lea.vmem %s1924_s26, 128 }
 0x403   : > { %p1345_p8 = scmp.ne.s32.totalorder %s1924_s26, %s1344_s30 }
 0x405   : > { %s1914_s25 = sshll.u32 %s2146_s13, 7  ;;  %p2151_p10 = scmp.ne.s32.totalorder %s2147_s20, 0 }
 0x406   : > { %s1920_s15 = scalar_lea.hbm %s2148_s16, %s1914_s25  ;;  %s1570_s13 = smov [#allocation9]  }
 0x407   : > { %s2150_s17 = smov %s2149_s18  ;;  %s1930_s29 = scalar_lea.hbm %s2149_s18, %s1914_s25 }
 0x408   : > { %p1346_p12 = pnand %p1345_p8, %p2151_p10  ;;  %s1348_s9 = sshll.u32 %s1570_s13, 4  ;;  %s1349_s9 = int_to_ptr.vmem [resolvable:$false] %s1348_s9 }
 0x409   : > { %s1350_s14 = scalar_lea.vmem %s1349_s9, 256  ;;  %p1351_p3 = scmp.lt.s32.totalorder %s1924_s26, %s1349_s9 }
 0x40a   : > { %p1347_p11 = pneg %p1346_p12  ;;  %p1352_p9 = scmp.lt.s32.totalorder %s1350_s14, %s1344_s30 }
 0x40c   : > { %p1353_p2 = por %p1352_p9, %p1351_p3 }
 0x40e   : > { %p1354_p0 = pnand %p1353_p2, %p1347_p11 }
 0x410   : > { %1357 = shalt.err (!%p1354_p0)
}
 0x411   : > { %s1358_s12 = scalar_lea.hbm %s1920_s15, 128  ;;  %s1362_s4 = scalar_lea.hbm %s2148_s16, 256 }
 0x412   : > { %p1359_p7 = scmp.ne.s32.totalorder %s1920_s15, %s1358_s12  ;;  %p1363_p4 = scmp.lt.u32.totalorder %s1920_s15, %s2148_s16 }
 0x413   : > { %p1364_p5 = scmp.lt.u32.totalorder %s1362_s4, %s1358_s12  ;;  %p1366_p8 = scmp.lt.u32.totalorder %s1358_s12, %s1920_s15 }
 0x414   : > { %p1360_p13 = pnand %p1359_p7, %p2151_p10 }
 0x415   : > { %p1365_p6 = por %p1364_p5, %p1363_p4 }
 0x416   : > { %p1361_p1 = pneg %p1360_p13 }
 0x417   : > { %p1367_p12 = por %p1366_p8, %p1365_p6 }
 0x419   : > { %p1368_p11 = pnand %p1367_p12, %p1361_p1 }
 0x41b   : > { %1371 = shalt.err (!%p1368_p11)
}
 0x41c   : > { %1170 = dma.vmem_to_hbm [thread:$0]  (%p2151_p10), %s1924_s26, 128, %s1920_s15, %s1932_s24  }
 0x41d   : > { %s2152_s30 = scalar_lea.vmem [#allocation8], %s1862_s8  ;;  %s2153_s27 = sld [smem:[#allocation38_spill]] }
 0x41e   : > { %s876_s9 = sshll.u32 %s2152_s30, 4  ;;  %s2155_s18 = scalar_lea.vmem [#allocation11], %s1862_s8  ;;  %s1964_s9 = int_to_ptr.vmem [resolvable:$true] %s876_s9 }
 0x41f   : > { %s1968_s13 = sshll.u32 %s2155_s18, 4  ;;  %s848_s0 = scalar_lea.sflag [#allocation5], %s1859_s5  ;;  %s903_s13 = int_to_ptr.vmem [resolvable:$true] %s1968_s13 }
 0x420   : > { %s1372_s1 = scalar_lea.vmem %s1964_s9, 128  ;;  %s1571_s15 = smov [#allocation8]  }
 0x421   : > { %p1373_p3 = scmp.ne.s32.totalorder %s1964_s9, %s1372_s1  ;;  %s1376_s26 = sshll.u32 %s1571_s15, 4  ;;  %s1377_s26 = int_to_ptr.vmem [resolvable:$false] %s1376_s26 }
 0x422   : > { %s1378_s30 = scalar_lea.vmem %s1377_s26, 256  ;;  %p1379_p0 = scmp.lt.s32.totalorder %s1964_s9, %s1377_s26 }
 0x423   : > { %s2154_s4 = smov %s2153_s27  ;;  %s1962_s12 = scalar_lea.hbm %s2153_s27, %s1914_s25 }
 0x424   : > { %p1374_p9 = pnand %p1373_p3, %p2151_p10  ;;  %p1380_p7 = scmp.lt.s32.totalorder %s1378_s30, %s1372_s1 }
 0x426   : > { %p1375_p2 = pneg %p1374_p9  ;;  %p1381_p13 = por %p1380_p7, %p1379_p0 }
 0x428   : > { %p1382_p1 = pnand %p1381_p13, %p1375_p2 }
 0x42a   : > { %1385 = shalt.err (!%p1382_p1)
}
 0x42b   : > { %s1386_s14 = scalar_lea.hbm %s1930_s29, 128  ;;  %s1390_s18 = scalar_lea.hbm %s2150_s17, 256 }
 0x42c   : > { %p1387_p4 = scmp.ne.s32.totalorder %s1930_s29, %s1386_s14  ;;  %p1391_p8 = scmp.lt.u32.totalorder %s1930_s29, %s2150_s17 }
 0x42d   : > { %p1392_p12 = scmp.lt.u32.totalorder %s1390_s18, %s1386_s14  ;;  %p1394_p3 = scmp.lt.u32.totalorder %s1386_s14, %s1930_s29 }
 0x42e   : > { %p1388_p5 = pnand %p1387_p4, %p2151_p10 }
 0x42f   : > { %p1393_p11 = por %p1392_p12, %p1391_p8 }
 0x430   : > { %p1389_p6 = pneg %p1388_p5 }
 0x431   : > { %p1395_p9 = por %p1394_p3, %p1393_p11 }
 0x433   : > { %p1396_p2 = pnand %p1395_p9, %p1389_p6 }
 0x435   : > { %1399 = shalt.err (!%p1396_p2)
}
 0x436   : > { %1169 = dma.vmem_to_hbm [thread:$0]  (%p2151_p10), %s1964_s9, 128, %s1930_s29, %s848_s0  }
 0x437   : > { %s1400_s1 = scalar_lea.vmem %s903_s13, 128  ;;  %s1572_s30 = smov [#allocation11]  }
 0x438   : > { %p1401_p0 = scmp.ne.s32.totalorder %s903_s13, %s1400_s1  ;;  %s1404_s21 = sshll.u32 %s1572_s30, 4  ;;  %s1405_s21 = int_to_ptr.vmem [resolvable:$false] %s1404_s21 }
 0x439   : > { %s1406_s14 = scalar_lea.vmem %s1405_s21, 256  ;;  %p1407_p1 = scmp.lt.s32.totalorder %s903_s13, %s1405_s21 }
 0x43a   : > { %p1402_p7 = pnand %p1401_p0, %p2151_p10  ;;  %p1408_p4 = scmp.lt.s32.totalorder %s1406_s14, %s1400_s1 }
 0x43c   : > { %p1403_p13 = pneg %p1402_p7  ;;  %p1409_p5 = por %p1408_p4, %p1407_p1 }
 0x43e   : > { %p1410_p6 = pnand %p1409_p5, %p1403_p13 }
 0x440   : > { %1413 = shalt.err (!%p1410_p6)
}
 0x441   : > { %s1414_s0 = scalar_lea.hbm %s1962_s12, 128  ;;  %s1418_s27 = scalar_lea.hbm %s2154_s4, 256 }
 0x442   : > { %p1415_p8 = scmp.ne.s32.totalorder %s1962_s12, %s1414_s0  ;;  %p1419_p3 = scmp.lt.u32.totalorder %s1962_s12, %s2154_s4 }
 0x443   : > { %p1420_p9 = scmp.lt.u32.totalorder %s1418_s27, %s1414_s0  ;;  %p1422_p0 = scmp.lt.u32.totalorder %s1414_s0, %s1962_s12 }
 0x444   : > { %p1416_p12 = pnand %p1415_p8, %p2151_p10 }
 0x445   : > { %p1421_p2 = por %p1420_p9, %p1419_p3 }
 0x446   : > { %p1417_p11 = pneg %p1416_p12 }
 0x447   : > { %p1423_p7 = por %p1422_p0, %p1421_p2 }
 0x449   : > { %p1424_p13 = pnand %p1423_p7, %p1417_p11 }
 0x44b   : > { %1427 = shalt.err (!%p1424_p13)
}
 0x44c   : > { %1171 = dma.vmem_to_hbm [thread:$0]  (%p2151_p10), %s903_s13, 128, %s1962_s12, %s1932_s24  }
 0x44d   : > { %s2156_s30 = sld [smem:[#allocation39_spill]]  ;;  %s2157_s14 = scalar_lea.vmem [#allocation12], %s1862_s8 }
 0x44e   : > { %s915_s29 = sshll.u32 %s2157_s14, 4  ;;  %s863_s0 = scalar_lea.sflag [#allocation13], %s1859_s5  ;;  %s916_s29 = int_to_ptr.vmem [resolvable:$true] %s915_s29 }
 0x44f   : > { %s1428_s9 = scalar_lea.vmem %s916_s29, 128  ;;  %s1573_s27 = smov [#allocation12]  }
 0x450   : > { %p1429_p1 = scmp.ne.s32.totalorder %s916_s29, %s1428_s9  ;;  %s1432_s18 = sshll.u32 %s1573_s27, 4  ;;  %s1433_s18 = int_to_ptr.vmem [resolvable:$false] %s1432_s18 }
 0x451   : > { %s1434_s15 = scalar_lea.vmem %s1433_s18, 256  ;;  %p1435_p6 = scmp.lt.s32.totalorder %s916_s29, %s1433_s18 }
 0x452   : > { %p1430_p4 = pnand %p1429_p1, %p2151_p10  ;;  %p1436_p8 = scmp.lt.s32.totalorder %s1434_s15, %s1428_s9 }
 0x453   : > { %s2015_s21 = scalar_lea.hbm %s2156_s30, %s1914_s25 }
 0x454   : > { %p1431_p5 = pneg %p1430_p4  ;;  %p1437_p12 = por %p1436_p8, %p1435_p6 }
 0x456   : > { %p1438_p11 = pnand %p1437_p12, %p1431_p5 }
 0x458   : > { %1441 = shalt.err (!%p1438_p11)
}
 0x459   : > { %s1442_s5 = scalar_lea.hbm %s2015_s21, 128  ;;  %s1446_s24 = scalar_lea.hbm %s2156_s30, 256 }
 0x45a   : > { %p1443_p3 = scmp.ne.s32.totalorder %s2015_s21, %s1442_s5  ;;  %p1447_p0 = scmp.lt.u32.totalorder %s2015_s21, %s2156_s30 }
 0x45b   : > { %p1448_p7 = scmp.lt.u32.totalorder %s1446_s24, %s1442_s5  ;;  %p1450_p1 = scmp.lt.u32.totalorder %s1442_s5, %s2015_s21 }
 0x45c   : > { %p1444_p9 = pnand %p1443_p3, %p2151_p10 }
 0x45d   : > { %p1449_p13 = por %p1448_p7, %p1447_p0 }
 0x45e   : > { %p1445_p2 = pneg %p1444_p9 }
 0x45f   : > { %p1451_p4 = por %p1450_p1, %p1449_p13 }
 0x461   : > { %p1452_p5 = pnand %p1451_p4, %p1445_p2 }
 0x463   : > { %1455 = shalt.err (!%p1452_p5)
}
 0x464   : > { %1172 = dma.vmem_to_hbm [thread:$0]  (%p2151_p10), %s916_s29, 128, %s2015_s21, %s863_s0  }
 0x465 PF: > { %s2158_s26 = sld [smem:[#allocation19_spill]]  ;;  %s2159_s1 = sld [smem:[#allocation29_spill]] }
 0x466   : > { %p1190_p6 = scmp.ge.s32.totalorder %s1562_s28, 2 }
 0x46b   : > { %s927_s14 = sand.u32 1, %s2158_s26   ;;  %p2160_p8 = scmp.ne.s32.totalorder %s2159_s1, 0 }
 0x46c   : > { %s928_s9 = scalar_lea.sflag [#allocation5], %s927_s14 }
 0x46d   : > { %p1178_p12 = pnand %p1190_p6, %p2160_p8 }
 0x46f   : > { %1509 = dma.done.wait (!%p1178_p12), %s928_s9, 128  }
 0x470   : > { %1511 = vsyncadd (!%p1178_p12), %s928_s9, 4294967168  ;;  %s2161_s27 = sadd.s32 4294967294, %s1562_s28  }
 0x471   : > { %s936_s18 = sand.u32 1, %s2161_s27  }
 0x472   : > { %s937_s15 = scalar_lea.sflag [#allocation10], %s936_s18 }
 0x473   : > { %1513 = dma.done.wait (!%p1178_p12), %s937_s15, 256  }
 0x474   : > { %1515 = vsyncadd (!%p1178_p12), %s937_s15, 4294967040  ;;  %s955_s20 = scalar_lea.sflag [#allocation13], %s927_s14 }
 0x475   : > { %1517 = dma.done.wait (!%p1178_p12), %s955_s20, 128  }
 0x476   : > { %1519 = vsyncadd (!%p1178_p12), %s955_s20, 4294967168  ;;  %s41_s28 = sadd.s32 1, %s1562_s28   ;;  %s2162_s21 = sld [smem:[#allocation20_spill]] }
 0x477   : > { %p38_p10 = scmp.ge.s32.totalorder %s41_s28, 6   ;;  %s2163_s20 = sld [smem:[#allocation26_spill]] }
 0x478   : > { %s2164_s29 = sld [smem:[#allocation27_spill]]  ;;  %s2165_s24 = sld [smem:[#allocation22_spill]] }
 0x479   : > { %s2166_s25 = sld [smem:[#allocation23_spill]]  ;;  %s2167_s26 = sld [smem:[#allocation24_spill]] }
 0x47a   : > { %s2168_s27 = sld [smem:[#allocation25_spill]]  ;;  %s2169_s18 = smov %s1526_s19 }
 0x47b   :  { %40 = sbr.rel (!%p38_p10) target bundleno = 26 (0x1a), region = 183 }
 0x47c   : > { %s2170_s19 = smov %s2162_s21  ;;  %s2171_s21 = smov %s1538_s22 }
 0x47d   : > { %s2172_s22 = smov %s1542_s23 }
 0x47e   : > { %s2173_s23 = smov %s2164_s29 }
 0x482   :  { %960 = vsyncpa [#allocation4], 1 }
 0x483   :  { %962 = vsyncpa [#allocation4 + $0x1], 1 }
 0x484   :  { %963 = vsyncpa [#allocation7], 1 }
 0x485   :  { %965 = vsyncpa [#allocation7 + $0x1], 1 }
 0x486   :  { %966 = vsyncpa [#allocation5], 1 }
 0x487   :  { %968 = vsyncpa [#allocation5 + $0x1], 1 }
 0x488   :  { %969 = vsyncpa [#allocation10], 1 }
 0x489   :  { %971 = vsyncpa [#allocation10 + $0x1], 1 }
 0x48a   :  { %972 = vsyncpa [#allocation13], 1 }
 0x48b   :  { %974 = vsyncpa [#allocation13 + $0x1], 1 }

</bundles_post_ra>
